<compile_context>
chip_gen: v7x
topology: tpu7x:2x2x1
jax: 0.10.0
libtpu: 0.0.40
codegen_flags: <defaults>
</compile_context>

<pallas_src>
import jax
import jax.numpy as jnp
from jax.experimental import pallas as pl
from jax.experimental.pallas import tpu as pltpu


def _roi_gp_kernel(wT_ref, x_ref, o_ref, acc_ref):
    # wT_ref : (H, TN)      softmax'd mixing weights, heads-major
    # x_ref  : (TB, TN, F)  node features for TB graphs (contiguous HBM tile)
    # o_ref  : (TB, H, F)   per-head weighted sums (heads outer, features inner)
    # acc_ref: (TB, H, F)   f32 accumulator, resident across the N-tile axis
    k = pl.program_id(1)

    @pl.when(k == 0)
    def _():
        acc_ref[...] = jnp.zeros_like(acc_ref)

    tb = x_ref.shape[0]
    # Tiny broadcast (TB copies of H*TN weights) so the contraction is a
    # standard batched MXU matmul — no in-kernel transposes / exotic dims.
    wT = jnp.broadcast_to(wT_ref[...][None], (tb,) + wT_ref.shape)  # (TB, H, TN)
    acc_ref[...] += jnp.einsum(
        "bhn,bnf->bhf", wT, x_ref[...], preferred_element_type=jnp.float32
    )

    @pl.when(k == pl.num_programs(1) - 1)
    def _():
        o_ref[...] = acc_ref[...].astype(o_ref.dtype)


def _vmem_budgets():
    """Derive (vmem_limit_bytes, per-step block budget) from the actual chip."""
    cap = 64 << 20  # conservative default = v7x per-TC VMEM
    try:
        info = pltpu.get_tpu_info()
        cap = int(getattr(info, "vmem_capacity_bytes", cap)) or cap
    except Exception:
        pass
    vmem_limit = min(int(0.78 * cap), 100 << 20)  # ~100 MiB v5e/v6e, ~50 MiB v7x
    block_budget = min(cap // 2, 48 << 20)        # ~48 MiB v5e/v6e, 32 MiB v7x
    return vmem_limit, block_budget


def _choose_tiles(B, N, F, H, x_itemsize, out_itemsize, block_budget):
    """Pick (TB graphs, TN nodes) per grid step.

    Budget covers ALL double-buffered blocks (x, out, weights) plus the f32
    accumulator / matmul temp / weight broadcast. Preference order: stay within
    budget with a batch-grid >= 2 and even (both v7x cores busy & balanced),
    then >= 2, then any fit; prefer TN == N (no reduction axis) over larger TB.
    """
    def block_bytes(tb, tn):
        return (2 * tb * tn * F * x_itemsize      # x block, double-buffered
                + 2 * tb * H * F * out_itemsize   # out block, double-buffered
                + 2 * H * tn * x_itemsize         # weight block, double-buffered
                + 2 * tb * H * F * 4              # f32 accumulator + matmul temp
                + tb * H * tn * 4)                # broadcast weight temp

    # N-tile candidates: full N first (no reduction axis); otherwise divisors
    # keeping the (H, TN) weight block lane-aligned (TN % 128 == 0).
    tn_cands = [N] + sorted(
        (t for t in range(128, N, 128) if N % t == 0), reverse=True)
    tb_divs = sorted((t for t in range(1, B + 1) if B % t == 0), reverse=True)

    preds = (
        lambda tb, tn: (block_bytes(tb, tn) <= block_budget
                        and (B // tb) >= 2 and (B // tb) % 2 == 0),
        lambda tb, tn: block_bytes(tb, tn) <= block_budget and (B // tb) >= 2,
        lambda tb, tn: block_bytes(tb, tn) <= block_budget,
    )
    for pred in preds:
        for tn in tn_cands:
            for tb in tb_divs:
                if pred(tb, tn):
                    return tb, tn
    # TODO(synk): a single pathologically large graph (huge N*F with no
    # 128-multiple divisor of N) can still exceed the budget; fall back to the
    # smallest legal block and let the compiler spill.
    return 1, tn_cands[-1]


def roi_aware_gp(x_flat, batch, w, num_nodes, *, use_pallas=None,
                 low_precision=False):
    """x_flat: (B*num_nodes, F) node features; batch: (B*num_nodes,) graph ids
    (assumed sorted with equal-sized graphs); w: (num_nodes, num_heads)."""
    total, F = x_flat.shape
    N = num_nodes
    assert total % N == 0, "total node count must be B * num_nodes"
    B = total // N
    H = w.shape[1]
    out_dtype = x_flat.dtype

    # to_dense_batch with sorted, equal-sized graphs == free reshape.
    # TODO(synk): ragged graphs (to_dense_batch zero-padding) are not handled;
    # `batch` is assumed to equal jnp.repeat(arange(B), N).
    del batch
    x_dense = x_flat.reshape(B, N, F)

    # Batch-invariant softmax hoisted out of the kernel; pre-transposed (H, N).
    w_soft_T = jax.nn.softmax(w.astype(jnp.float32), axis=0).T

    stream_dtype = jnp.bfloat16 if low_precision else x_flat.dtype
    x_stream = x_dense.astype(stream_dtype)
    wT = w_soft_T.astype(stream_dtype)

    if use_pallas is None:
        # At tiny sizes, fixed pallas_call overhead dominates — let XLA fuse it.
        use_pallas = (B * N * F * jnp.dtype(stream_dtype).itemsize) >= (256 << 10)
    if not use_pallas:
        out = jnp.einsum("hn,bnf->bhf", w_soft_T,
                         x_dense.astype(jnp.float32)).astype(out_dtype)
        return out.reshape(B, H * F)

    vmem_limit, block_budget = _vmem_budgets()
    TB, TN = _choose_tiles(B, N, F, H,
                           jnp.dtype(stream_dtype).itemsize,
                           jnp.dtype(out_dtype).itemsize,
                           block_budget)
    grid = (B // TB, N // TN)

    out_3d = pl.pallas_call(
        _roi_gp_kernel,
        out_shape=jax.ShapeDtypeStruct((B, H, F), out_dtype),
        grid_spec=pltpu.PrefetchScalarGridSpec(
            num_scalar_prefetch=0,
            grid=grid,
            in_specs=[
                pl.BlockSpec((H, TN), lambda b, k: (0, k)),         # weights
                pl.BlockSpec((TB, TN, F), lambda b, k: (b, k, 0)),  # x tile
            ],
            out_specs=pl.BlockSpec((TB, H, F), lambda b, k: (b, 0, 0)),
            scratch_shapes=[pltpu.VMEM((TB, H, F), jnp.float32)],
        ),
        compiler_params=pltpu.CompilerParams(
            dimension_semantics=("parallel", "arbitrary"),
            vmem_limit_bytes=vmem_limit,
        ),
    )(wT, x_stream)

    # Heads outer, features inner — contiguous, free reshape.
    return out_3d.reshape(B, H * F)


def roi_aware_gp_ref(x_flat, batch, w, num_nodes):
    """Pure-JAX reference mirroring the PyTorch forward."""
    del batch
    total, F = x_flat.shape
    B = total // num_nodes
    x_dense = x_flat.reshape(B, num_nodes, F)            # (B, N, F)
    w_soft = jax.nn.softmax(w, axis=0)                   # (N, H)
    out = jnp.einsum("bnf,nh->bfh", x_dense, w_soft)     # (B, F, H)
    out = jnp.transpose(out, (0, 2, 1))                  # (B, H, F)
    return out.reshape(B, -1)


if __name__ == "__main__":
    B, N, F, H = 2, 16, 32, 4   # batch, num_nodes, feature dim, num_heads

    key = jax.random.PRNGKey(0)
    kx, kw = jax.random.split(key)
    x_flat = jax.random.normal(kx, (B * N, F), dtype=jnp.float32)
    batch = jnp.repeat(jnp.arange(B, dtype=jnp.int32), N)
    # deterministic parameter init, mimicking torch.rand((num_nodes, num_heads))
    w = jax.random.uniform(kw, (N, H), dtype=jnp.float32)

    # Force the Pallas path so the kernel itself is exercised at demo scale.
    out = roi_aware_gp(x_flat, batch, w, num_nodes=N, use_pallas=True)
    out = jax.block_until_ready(out)

    ref = roi_aware_gp_ref(x_flat, batch, w, num_nodes=N)
    assert out.shape == (B, H * F), out.shape
    assert jnp.allclose(out, ref, atol=1e-5, rtol=1e-5), "mismatch vs reference"

    print("KERNEL_OK")
</pallas_src>

<mosaic_0001>
module attributes {stable_mosaic.version = 11 : i64} {
  func.func @_roi_gp_kernel(%arg0: i32, %arg1: i32, %arg2: memref<4x16xf32, #tpu.memory_space<vmem>>, %arg3: memref<1x16x32xf32, #tpu.memory_space<vmem>>, %arg4: memref<1x4x32xf32, #tpu.memory_space<vmem>>, %arg5: memref<1x4x32xf32, #tpu.memory_space<vmem>>) attributes {dimension_semantics = [#tpu.dimension_semantics<parallel>, #tpu.dimension_semantics<arbitrary>], iteration_bounds = array<i64: 2, 1>, scalar_prefetch = 0 : i64, scratch_operands = 1 : i64, tpu.core_type = #tpu.core_type<tc>, window_params = [{transform_indices = @transform_0, window_bounds = array<i64: 4, 16>}, {transform_indices = @transform_1, window_bounds = array<i64: 1, 16, 32>}, {transform_indices = @transform_2, window_bounds = array<i64: 1, 4, 32>}]} {
    %c0_i32 = arith.constant 0 : i32
    %0 = arith.cmpi eq, %arg1, %c0_i32 : i32
    %1 = arith.extui %0 : i1 to i32
    %c0_i32_0 = arith.constant 0 : i32
    %2 = arith.cmpi ne, %1, %c0_i32_0 : i32
    scf.if %2 {
      %cst_13 = arith.constant 0.000000e+00 : f32
      %13 = vector.broadcast %cst_13 : f32 to vector<1x4x32xf32>
      %c0_14 = arith.constant 0 : index
      %c0_15 = arith.constant 0 : index
      %c0_16 = arith.constant 0 : index
      %14 = vector.load %arg5[%c0_14, %c0_15, %c0_16] : memref<1x4x32xf32, #tpu.memory_space<vmem>>, vector<1x4x32xf32>
      tpu.vector_store %arg5[%c0_14, %c0_15, %c0_16], %13 {strides = array<i32>} : memref<1x4x32xf32, #tpu.memory_space<vmem>>, vector<1x4x32xf32>,
    } else {
    }
    %c0 = arith.constant 0 : index
    %c0_1 = arith.constant 0 : index
    %3 = vector.load %arg2[%c0, %c0_1] : memref<4x16xf32, #tpu.memory_space<vmem>>, vector<4x16xf32>
    %4 = vector.shape_cast %3 : vector<4x16xf32> to vector<1x4x16xf32>
    %c0_2 = arith.constant 0 : index
    %c0_3 = arith.constant 0 : index
    %c0_4 = arith.constant 0 : index
    %5 = vector.load %arg5[%c0_2, %c0_3, %c0_4] : memref<1x4x32xf32, #tpu.memory_space<vmem>>, vector<1x4x32xf32>
    %c0_5 = arith.constant 0 : index
    %c0_6 = arith.constant 0 : index
    %c0_7 = arith.constant 0 : index
    %6 = vector.load %arg3[%c0_5, %c0_6, %c0_7] : memref<1x16x32xf32, #tpu.memory_space<vmem>>, vector<1x16x32xf32>
    "tpu.trace_start"() <{level = 10 : i32, message = "bhn,bnf->bhf"}> : () -> ()
    %cst = arith.constant dense<0.000000e+00> : vector<1x4x32xf32>
    %7 = tpu.matmul %4, %6, %cst {dimension_numbers = #tpu.dot_dimension_numbers<[2], [1], [1], [2], [0, 0, 0, 1, 1, 2], [0], [0]>} : vector<1x4x16xf32>, vector<1x16x32xf32>, vector<1x4x32xf32> -> vector<1x4x32xf32>
    "tpu.trace_stop"() : () -> ()
    %8 = arith.addf %5, %7 : vector<1x4x32xf32>
    %c0_8 = arith.constant 0 : index
    %c0_9 = arith.constant 0 : index
    %c0_10 = arith.constant 0 : index
    %9 = vector.load %arg5[%c0_8, %c0_9, %c0_10] : memref<1x4x32xf32, #tpu.memory_space<vmem>>, vector<1x4x32xf32>
    tpu.vector_store %arg5[%c0_8, %c0_9, %c0_10], %8 {strides = array<i32>} : memref<1x4x32xf32, #tpu.memory_space<vmem>>, vector<1x4x32xf32>,
    %c0_i32_11 = arith.constant 0 : i32
    %10 = arith.cmpi eq, %arg1, %c0_i32_11 : i32
    %11 = arith.extui %10 : i1 to i32
    %c0_i32_12 = arith.constant 0 : i32
    %12 = arith.cmpi ne, %11, %c0_i32_12 : i32
    scf.if %12 {
      %c0_13 = arith.constant 0 : index
      %c0_14 = arith.constant 0 : index
      %c0_15 = arith.constant 0 : index
      %13 = vector.load %arg5[%c0_13, %c0_14, %c0_15] : memref<1x4x32xf32, #tpu.memory_space<vmem>>, vector<1x4x32xf32>
      %c0_16 = arith.constant 0 : index
      %c0_17 = arith.constant 0 : index
      %c0_18 = arith.constant 0 : index
      %14 = vector.load %arg4[%c0_16, %c0_17, %c0_18] : memref<1x4x32xf32, #tpu.memory_space<vmem>>, vector<1x4x32xf32>
      tpu.vector_store %arg4[%c0_16, %c0_17, %c0_18], %13 {strides = array<i32>} : memref<1x4x32xf32, #tpu.memory_space<vmem>>, vector<1x4x32xf32>,
    } else {
    }
    return
  }
  func.func @transform_0(%arg0: i32, %arg1: i32) -> (i32, i32) {
    %c0_i32 = arith.constant 0 : i32
    %c0_i32_0 = arith.constant 0 : i32
    return %c0_i32, %arg1 : i32, i32
  }
  func.func @transform_1(%arg0: i32, %arg1: i32) -> (i32, i32, i32) {
    %c0_i32 = arith.constant 0 : i32
    %c0_i32_0 = arith.constant 0 : i32
    return %arg0, %arg1, %c0_i32 : i32, i32, i32
  }
  func.func @transform_2(%arg0: i32, %arg1: i32) -> (i32, i32, i32) {
    %c0_i32 = arith.constant 0 : i32
    %c0_i32_0 = arith.constant 0 : i32
    %c0_i32_1 = arith.constant 0 : i32
    return %arg0, %c0_i32, %c0_i32_0 : i32, i32, i32
  }
}

</mosaic_0001>

<bundles_post_ra>
// kernel: tpu_custom_call.1
= control target key start
LH: loop header
LB: loop body
LE: loop exit
PB: predicated region body
PF: predicated region fallthrough
CT: control target
= control target key end

     0   :  { %7 = vsyncpa [#allocation4], 0  ;;  %s901_s0 = inlined_call_operand.hbm [shape: f32[4,16], index: 0, kind: input, shape index: {}]   ;;  %s902_s1 = inlined_call_operand.hbm [shape: f32[2,16,32], index: 1, kind: input, shape index: {}]   ;;  %s903_s2 = inlined_call_operand.hbm [shape: f32[2,4,32], index: 2, kind: output, shape index: {}]  }
   0x1   :  { %8 = vsyncpa [#allocation7], 0 }
   0x2   :  { %10 = vsyncpa [#allocation7 + $0x1], 0 }
   0x3   :  { %11 = vsyncpa [#allocation5], 0 }
   0x4   :  { %13 = vsyncpa [#allocation5 + $0x1], 0  ;;  %s678_s9 = smov 0   ;;  %s680_s10 = smov 0  }
   0x5   :  { %s682_s11 = smov 0   ;;  %s684_s12 = smov 0  }
   0x6   :  { %s686_s13 = smov 0   ;;  %s688_s14 = smov 0  }
   0x7 LB: > { %s400_s15 = sadd.s32 4294967295, %s653_s14   ;;  %s401_s16 = sadd.s32 4294967294, %s653_s14   ;;  %s653_s14 = sphi %s688_s14, %s19_s14   ;;  %s649_s13 = sphi %s686_s13, %s931_s13   ;;  %s645_s12 = sphi %s684_s12, %s930_s12   ;;  %s641_s11 = sphi %s682_s11, %s929_s11   ;;  %s637_s10 = sphi %s680_s10, %s928_s10   ;;  %s633_s9 = sphi %s678_s9, %s927_s9  }
   0x8   : > { %s66_s17 = sadd.s32 1, %s641_s11  ;;  %p73_p0 = scmp.ne.s32.totalorder %s641_s11, %s637_s10 }
   0x9   : > { %p74_p1 = scmp.eq.s32.totalorder %s653_s14, 0  ;;  %p79_p2 = scmp.ne.s32.totalorder %s637_s10, %s633_s9 }
   0xa   : > { %p716_p3 = scmp.eq.s32.totalorder %s400_s15, 0  ;;  %p103_p4 = scmp.eq.s32.totalorder %s400_s15, 1 }
   0xb   : > { %p720_p5 = por %p74_p1, %p73_p0  ;;  %p109_p6 = scmp.eq.s32.totalorder %s401_s16, 1 }
   0xc   : > { %s910_s18 = scalar_select %p716_p3, 1, 0 }
   0xd   : > { %p726_p7 = por %p716_p3, %p79_p2  ;;  %p730_p8 = por %p103_p4, %p73_p0 }
   0xe   : > { %p734_p9 = por %p109_p6, %p79_p2  ;;  %p402_p10 = scmp.ge.s32.totalorder %s653_s14, 1 }
   0xf   : > { %s912_s20 = scalar_select %p726_p7, 1, 0 }
  0x10   : > { %s913_s21 = scalar_select %p730_p8, 1, 0 }
  0x11   : > { %s914_s22 = scalar_select %p734_p9, 1, 0 }
  0x12   : > { %p116_p11 = scmp.lt.s32.totalorder %s653_s14, 3  ;;  %s655_s24 = smov [#allocation3]  }
  0x13   : > { %s131_s25 = sshll.u32 %s655_s24, 4  ;;  %p452_p1 = scmp.lt.s32.totalorder %s653_s14, 2  ;;  %s132_s25 = int_to_ptr.vmem [resolvable:$true] %s131_s25 }
  0x14   : > { %p741_p13 = pnand %p402_p10, %p116_p11  ;;  %s31_s28 = sadd.s32 1, %s649_s13 }
  0x15   : > { %p750_p4 = pnand %p452_p1, %p720_p5  ;;  %p761_p6 = scmp.ge.s32.totalorder %s31_s28, 2 }
  0x16   : > { %s915_s23 = scalar_select %p741_p13, 1, 0 }
  0x17   : > { %p439_p0 = pneg %p741_p13  ;;  %s142_s30 = sand.u32 1, %s641_s11  }
  0x18   : > { %s916_s26 = scalar_select %p750_p4, 1, 0 }
  0x19   : > { %p756_p2 = pnand %p439_p0, %p716_p3  ;;  %s509_s5 = scalar_lea.hbm %s901_s0, 64 }
  0x1a   : > { %s918_s29 = scalar_select %p761_p6, 1, 0 }
  0x1b   : > { %p510_p5 = scmp.ne.s32.totalorder %s901_s0, %s509_s5  ;;  %p511_p10 = pneg %p756_p2 }
  0x1c   : > { %p516_p0 = scmp.lt.u32.totalorder %s509_s5, %s901_s0 }
  0x1d   : > { %p512_p11 = pnand %p511_p10, %p510_p5 }
  0x1f   : > { %p513_p1 = pneg %p512_p11 }
  0x21   : > { %p518_p12 = pnand %p516_p0, %p513_p1 }
  0x23   : > { %521 = shalt.err (!%p518_p12)
}
  0x24   : > { %s522_s16 = scalar_lea.vmem %s132_s25, 64  ;;  %p530_p3 = scmp.lt.s32.totalorder %s132_s25, %s132_s25 }
  0x25   : > { %p523_p9 = scmp.ne.s32.totalorder %s132_s25, %s522_s16  ;;  %p531_p13 = scmp.lt.s32.totalorder %s522_s16, %s522_s16 }
  0x27   : > { %p525_p8 = pnand %p523_p9, %p511_p10  ;;  %p532_p4 = por %p531_p13, %p530_p3 }
  0x29   : > { %p526_p7 = pneg %p525_p8 }
  0x2b   : > { %p533_p6 = pnand %p532_p4, %p526_p7 }
  0x2d   : > { %536 = shalt.err (!%p533_p6)
}
  0x2e   : > { %442 = dma.hbm_to_vmem [thread:$0]  (!%p756_p2), %s901_s0, 64, %s132_s25, [#allocation4]  }
  0x2f   : > { %p919_p9 = scmp.ne.s32.totalorder %s918_s29, 0  ;;  %s405_s3 = sshll.u32 %s142_s30, 4 }
  0x30   : > { %s417_s5 = sshll.u32 %s649_s13, 8  ;;  %s146_s8 = scalar_lea.vmem [#allocation6], %s405_s3 }
  0x31   : > { %s933_s28 = smov (%p919_p9, %s31_s28), 0  ;;  %s792_s7 = scalar_lea.hbm %s902_s1, %s417_s5 }
  0x32   : > { %s61_s4 = ssub.s32 %s649_s13, %s933_s28  ;;  %s155_s15 = sshll.u32 %s146_s8, 4  ;;  %s799_s15 = int_to_ptr.vmem [resolvable:$true] %s155_s15 }
  0x33   : > { %p64_p3 = scmp.eq.s32.totalorder %s61_s4, 0  ;;  %s801_s29 = scalar_lea.sflag [#allocation7], %s142_s30 }
  0x34   : > { %s537_s16 = scalar_lea.hbm %s792_s7, 256  ;;  %p920_p8 = scmp.ne.s32.totalorder %s916_s26, 0 }
  0x35   : > { %s797_s25 = scalar_select %p64_p3, %s641_s11, %s66_s17  }
  0x36   : > { %p538_p7 = scmp.ne.s32.totalorder %s792_s7, %s537_s16  ;;  %p539_p12 = pneg %p920_p8 }
  0x37   : > { %s542_s3 = scalar_lea.hbm %s902_s1, 512  ;;  %p543_p2 = scmp.lt.u32.totalorder %s792_s7, %s902_s1 }
  0x38   : > { %p540_p13 = pnand %p539_p12, %p538_p7  ;;  %p544_p6 = scmp.lt.u32.totalorder %s542_s3, %s537_s16 }
  0x39   : > { %p546_p10 = scmp.lt.u32.totalorder %s537_s16, %s792_s7 }
  0x3a   : > { %p541_p4 = pneg %p540_p13  ;;  %p545_p5 = por %p544_p6, %p543_p2 }
  0x3c   : > { %p547_p11 = por %p546_p10, %p545_p5 }
  0x3e   : > { %p548_p1 = pnand %p547_p11, %p541_p4 }
  0x40   : > { %551 = shalt.err (!%p548_p1)
}
  0x41   : > { %s552_s17 = scalar_lea.vmem %s799_s15, 256  ;;  %s656_s30 = smov [#allocation6]  }
  0x42   : > { %p553_p0 = scmp.ne.s32.totalorder %s799_s15, %s552_s17  ;;  %s557_s27 = sshll.u32 %s656_s30, 4  ;;  %s558_s27 = int_to_ptr.vmem [resolvable:$false] %s557_s27 }
  0x43   : > { %s559_s6 = scalar_lea.vmem %s558_s27, 512  ;;  %p560_p7 = scmp.lt.s32.totalorder %s799_s15, %s558_s27 }
  0x44   : > { %p555_p9 = pnand %p553_p0, %p539_p12  ;;  %p561_p13 = scmp.lt.s32.totalorder %s559_s6, %s552_s17 }
  0x46   : > { %p556_p3 = pneg %p555_p9  ;;  %p562_p2 = por %p561_p13, %p560_p7 }
  0x48   : > { %p563_p6 = pnand %p562_p2, %p556_p3 }
  0x4a   : > { %566 = shalt.err (!%p563_p6)
}
  0x4b   : > { %s657_s8 = smov 128   ;;  %s658_s16 = smov 8  }
  0x4c   : > { %446 = dma.hbm_to_vmem [thread:$0]  (!%p920_p8), %s792_s7, 256, %s799_s15, %s801_s29, %s657_s8, %s657_s8, %s658_s16  }
  0x4d   : > { %p921_p12 = scmp.ne.s32.totalorder %s915_s23, 0 }
  0x4e   : > { %p922_p4 = scmp.ne.s32.totalorder (!%p921_p12), %s910_s18, 0 }
  0x4f   : > { %167 = sbr.rel (%p921_p12) target bundleno = 334 (0x14e), region = 28 }
  0x56   : > { %620 = dma.done.wait (%p922_p4), [#allocation4], 64  }
  0x57   : > { %622 = vsyncadd (%p922_p4), [#allocation4], 4294967232  ;;  %s836_s19 = sand.u32 1, %s637_s10   ;;  %p923_p5 = scmp.ne.s32.totalorder %s912_s20, 0 }
  0x58   : > { %s410_s24 = sshll.u32 %s836_s19, 4  ;;  %s174_s3 = scalar_lea.sflag [#allocation7], %s836_s19 }
  0x59   : > { %s177_s4 = scalar_lea.vmem [#allocation6], %s410_s24 }
  0x5a   : > { %624 = dma.done.wait (%p923_p5), %s174_s3, 256  }
  0x5b   : > { %626 = vsyncadd (%p923_p5), %s174_s3, 4294967040  ;;  %vm203_vm0 = vcmask 257024   ;;  %v659_v0 = vmov 0.0|0.0   ;;  %v660_v1 = vmov 0.0   ;;  %vm661_vm1 = vmmov 0   ;;  %v207_v2 = vld [vmem:[%s177_s4] sm:$0xff] }
  0x5c   : > { %428 = vmatprep.subr.bf16.mxu0 %v659_v0  ;;  %204 = vst.msk [vmem:[#allocation2] sm:$0xf] %vm203_vm0, %v660_v1  ;;  %425 = vmatprep.mubr.msk.f32.mxu0 %vm661_vm1, %v660_v1  ;;  %v208_v3 = vld [vmem:[%s177_s4 + $0x8] sm:$0xff]  ;;  %vm209_vm2 = vcmask 130048   ;;  %s411_s18 = sshll.u32 %s836_s19, 2  ;;  %s414_s20 = sshll.u32 %s645_s12, 6 }
  0x5d   : > { %v429_v4 = vpack.c.bf16 %v208_v3, %v207_v2  ;;  %v205_v5 = vld [vmem:[#allocation3] sm:$0xf]  ;;  %s197_s23 = scalar_lea.vmem [#allocation8], %s411_s18  ;;  %s851_s29 = scalar_lea.hbm %s903_s2, %s414_s20 }
  0x5e   : > { %s305_s26 = sshll.u32 %s197_s23, 4  ;;  %s292_s5 = scalar_lea.sflag [#allocation5], %s836_s19  ;;  %s853_s26 = int_to_ptr.vmem [resolvable:$true] %s305_s26 }
  0x5f   : > { %430 = vmatpush3.bf16.msra.mxu0 %v429_v4  ;;  %s567_s17 = scalar_lea.vmem %s853_s26, 64  ;;  %p924_p10 = scmp.ne.s32.totalorder %s913_s21, 0 }
  0x60   : > { %p568_p8 = scmp.ne.s32.totalorder %s853_s26, %s567_s17  ;;  %s662_s12 = smov [#allocation8]  }
  0x61   : > { %s571_s30 = sshll.u32 %s662_s12, 4  ;;  %s572_s30 = int_to_ptr.vmem [resolvable:$false] %s571_s30 }
  0x62   : > { %426 = vmatmul.mubr.msk.f32.vlgmr.msra.gmra.mrb[0].mxu0 %vm209_vm2, %v205_v5  ;;  %p569_p11 = pnand %p568_p8, %p924_p10  ;;  %s573_s27 = scalar_lea.vmem %s572_s30, 128 }
  0x63   : > { %v206_v6 = vld [vmem:[#allocation2] sm:$0xf]  ;;  %p574_p0 = scmp.lt.s32.totalorder %s853_s26, %s572_s30  ;;  %p575_p9 = scmp.lt.s32.totalorder %s573_s27, %s567_s17 }
  0x64   : > { %p570_p1 = pneg %p569_p11 }
  0x65   : > { %p576_p3 = por %p575_p9, %p574_p0 }
  0x67   : > { %p577_p7 = pnand %p576_p3, %p570_p1 }
 0x135   : > { %v279_v7 = vpop.f32.mrb[0].mxu0 }
 0x136   : > { %v283_v8 = vadd.f32 %v279_v7, %v206_v6  ;;  %v427_v9 = vpop.f32.mrb[1].mxu0 }
 0x138   : > { %285 = vst.msk [vmem:[#allocation2] sm:$0xf] %vm203_vm0, %v283_v8 }
 0x13f   : > { %v289_v10 = vld [vmem:[#allocation2] sm:$0xf] }
 0x140   : > { %290 = vst.msk [vmem:[%s197_s23] sm:$0xf] %vm203_vm0, %v289_v10 }
 0x141   : > { %580 = shalt.err (!%p577_p7)
}
 0x142   : > { %s581_s6 = scalar_lea.hbm %s851_s29, 64  ;;  %s585_s19 = scalar_lea.hbm %s903_s2, 128 }
 0x143   : > { %p582_p13 = scmp.ne.s32.totalorder %s851_s29, %s581_s6  ;;  %p586_p12 = scmp.lt.u32.totalorder %s851_s29, %s903_s2 }
 0x144   : > { %p587_p4 = scmp.lt.u32.totalorder %s585_s19, %s581_s6  ;;  %p589_p8 = scmp.lt.u32.totalorder %s581_s6, %s851_s29 }
 0x145   : > { %p583_p2 = pnand %p582_p13, %p924_p10 }
 0x146   : > { %p588_p5 = por %p587_p4, %p586_p12 }
 0x147   : > { %p584_p6 = pneg %p583_p2 }
 0x148   : > { %p590_p11 = por %p589_p8, %p588_p5 }
 0x14a   : > { %p591_p1 = pnand %p590_p11, %p584_p6 }
 0x14c   : > { %594 = shalt.err (!%p591_p1)
}
 0x14d   : > { %437 = dma.vmem_to_hbm [thread:$0]  (%p924_p10), %s853_s26, 64, %s851_s29, %s292_s5  }
 0x14e PF: > { %s317_s4 = sand.u32 1, %s633_s9   ;;  %p925_p0 = scmp.ne.s32.totalorder %s914_s22, 0 }
 0x14f   : > { %p926_p9 = scmp.ge.s32.totalorder %s653_s14, 2  ;;  %s318_s18 = scalar_lea.sflag [#allocation5], %s317_s4 }
 0x151   : > { %p448_p3 = pnand %p926_p9, %p925_p0 }
 0x153   : > { %628 = dma.done.wait (!%p448_p3), %s318_s18, 64  }
 0x154   : > { %630 = vsyncadd (!%p448_p3), %s318_s18, 4294967232  ;;  %s19_s14 = sadd.s32 1, %s653_s14   ;;  %s927_s9 = smov %s637_s10 }
 0x155   : > { %p16_p7 = scmp.ge.s32.totalorder %s19_s14, 4   ;;  %s928_s10 = smov %s641_s11 }
 0x156   : > { %s929_s11 = smov %s797_s25  ;;  %s930_s12 = smov %s649_s13 }
 0x157   : > { %s931_s13 = smov %s933_s28  ;;  %18 = sbr.rel (!%p16_p7) target bundleno = 7 (0x7), region = 87 }
 0x15e   :  { %323 = vsyncpa [#allocation4], 1 }
 0x15f   :  { %325 = vsyncpa [#allocation4 + $0x1], 1 }
 0x160   :  { %326 = vsyncpa [#allocation7], 1 }
 0x161   :  { %328 = vsyncpa [#allocation7 + $0x1], 1 }
 0x162   :  { %329 = vsyncpa [#allocation5], 1 }
 0x163   :  { %331 = vsyncpa [#allocation5 + $0x1], 1 }

</bundles_post_ra>
